<compile_context>
chip_gen: v7x
topology: tpu7x:2x2x1
jax: 0.10.0
libtpu: 0.0.40
codegen_flags: <defaults>
</compile_context>

<pallas_src>
import functools

import jax
import jax.numpy as jnp
from jax import lax
from jax.experimental import pallas as pl
from jax.experimental.pallas import tpu as pltpu


def _cdiv(a, b):
    return (a + b - 1) // b


def _round_up(x, m):
    return ((x + m - 1) // m) * m


def _predictor_head_kernel(num_layers, batch_total, block_rows, loss_type, eps,
                           matmul_dtype, x_ref, gt_ref, *rest):
    """One grid step processes `block_rows` batch rows.

    rest = (W_0, b_0, gamma_0, beta_0, ..., W_{L-1}, b_{L-1}, gamma_{L-1}, beta_{L-1},
            out_ref, rowerr_ref)
    """
    param_refs = rest[:4 * num_layers]
    out_ref = rest[4 * num_layers]
    rowerr_ref = rest[4 * num_layers + 1]

    h = x_ref[...].astype(jnp.float32)                      # (Bt, Din)

    for li in range(num_layers):
        w_ref, b_ref, g_ref, beta_ref = param_refs[4 * li: 4 * li + 4]
        # Linear: bf16 operands on the MXU, f32 accumulation.
        h = jnp.dot(h.astype(matmul_dtype), w_ref[...].astype(matmul_dtype),
                    preferred_element_type=jnp.float32) + b_ref[...]
        # LayerNorm over the feature (lane) dim; rsqrt goes to the EUP slot,
        # the lane reductions to the XLU slot (both otherwise idle here).
        mu = jnp.mean(h, axis=-1, keepdims=True)
        hc = h - mu
        var = jnp.mean(hc * hc, axis=-1, keepdims=True)
        h = hc * lax.rsqrt(var + eps) * g_ref[...] + beta_ref[...]
        # ReLU after every layer except the last (activate_last=False in PredictorHead).
        if li < num_layers - 1:
            h = jnp.maximum(h, 0.0)

    out_ref[...] = h.astype(out_ref.dtype)                  # (Bt, out_dim)

    # Element-wise part of the loss.  The last block may be ragged: out-of-bounds input
    # rows hold garbage (possibly NaN/Inf), so mask with jnp.where (a multiply would
    # propagate 0 * NaN = NaN).
    diff = h - gt_ref[...].astype(jnp.float32)
    per_elem = diff * diff if loss_type == 'MSE' else jnp.abs(diff)
    row = (pl.program_id(0) * block_rows
           + lax.broadcasted_iota(jnp.int32, (block_rows, 1), 0))
    row_err = jnp.sum(per_elem, axis=-1, keepdims=True)     # (Bt, 1)
    rowerr_ref[...] = jnp.where(row < batch_total, row_err, 0.0).astype(rowerr_ref.dtype)


def predictor_head_forward(x, gt, params, *, loss_coef=1.0, loss_type='MSE',
                           block_b=512, eps=1e-5, matmul_dtype=jnp.bfloat16):
    """PredictorHead.forward.

    x:  (B, Din) float32
    gt: (B, out_dim) float32
    params: flat tuple (W, b, gamma, beta) per layer, biases/affines shaped (1, width).
    Returns (loss, out) with out: (B, out_dim).
    """
    if loss_coef == 0:
        return 0, None                                       # PredictorHead short-circuit

    B, din = x.shape
    num_layers = len(params) // 4
    out_dim = params[-4].shape[1]

    # Weights live in HBM in the matmul dtype (bf16 by default -> half the weight DMA,
    # MXU-native on v6e/v7x).  Biases / LN affines stay f32.
    params = tuple(p.astype(matmul_dtype) if (i % 4 == 0) else p.astype(jnp.float32)
                   for i, p in enumerate(params))

    # Balanced batch tiling: big enough to amortize the ~0.35us per-step overhead and
    # fill the MXU M dim, small enough that the grid has >=2 steps when B > 8 so both
    # v7x TensorCores get work and the pipeline has something to overlap.
    n_blocks = max(1, _cdiv(B, block_b))
    if B > 8:
        n_blocks = max(n_blocks, 2)
    bt = _round_up(_cdiv(B, n_blocks), 8)
    grid = (_cdiv(B, bt),)

    in_specs = [pl.BlockSpec((bt, din), lambda i: (i, 0)),
                pl.BlockSpec((bt, out_dim), lambda i: (i, 0))]
    # Weights: full arrays, constant block index (fetched once, revisited every step).
    in_specs += [pl.BlockSpec(p.shape, lambda i: (0, 0)) for p in params]

    out_specs = [pl.BlockSpec((bt, out_dim), lambda i: (i, 0)),   # out
                 pl.BlockSpec((bt, 1), lambda i: (i, 0))]         # per-row loss term
    out_shape = [jax.ShapeDtypeStruct((B, out_dim), jnp.float32),
                 jax.ShapeDtypeStruct((B, 1), jnp.float32)]

    kernel = functools.partial(_predictor_head_kernel, num_layers, B, bt,
                               loss_type, eps, matmul_dtype)

    out, rowerr = pl.pallas_call(
        kernel,
        grid_spec=pltpu.PrefetchScalarGridSpec(
            num_scalar_prefetch=0,
            grid=grid,
            in_specs=in_specs,
            out_specs=out_specs,
        ),
        out_shape=out_shape,
        compiler_params=pltpu.CompilerParams(
            dimension_semantics=("parallel",)),              # batch axis -> both v7x TCs
    )(x, gt, *params)

    # Tiny finalization: scalar sum / mean / loss_coef scale (contiguous (B,) read).
    loss = loss_coef * jnp.sum(rowerr[:, 0]) / (B * out_dim)
    return loss, out


def predictor_head_reference(x, gt, params, *, loss_coef=1.0, loss_type='MSE', eps=1e-5):
    """Pure-JAX reference for correctness checking (f32 throughout)."""
    num_layers = len(params) // 4
    h = x
    for li in range(num_layers):
        w, b, g, beta = params[4 * li: 4 * li + 4]
        h = h @ w + b
        mu = jnp.mean(h, axis=-1, keepdims=True)
        var = jnp.mean((h - mu) ** 2, axis=-1, keepdims=True)
        h = (h - mu) / jnp.sqrt(var + eps) * g + beta
        if li < num_layers - 1:
            h = jax.nn.relu(h)
    if loss_type == 'MSE':
        loss = jnp.mean((h - gt) ** 2)
    else:
        loss = jnp.mean(jnp.abs(h - gt))
    return loss_coef * loss, h


def make_params(key, widths):
    """One (W, b, gamma, beta) group per Linear+LayerNorm layer, flattened."""
    params = []
    keys = jax.random.split(key, 3 * (len(widths) - 1))
    for li in range(len(widths) - 1):
        fan_in, fan_out = widths[li], widths[li + 1]
        kw, kb, kg = keys[3 * li: 3 * li + 3]
        w = jax.random.normal(kw, (fan_in, fan_out), jnp.float32) / jnp.sqrt(fan_in)
        b = 0.01 * jax.random.normal(kb, (1, fan_out), jnp.float32)
        gamma = 1.0 + 0.1 * jax.random.normal(kg, (1, fan_out), jnp.float32)
        beta = jnp.zeros((1, fan_out), jnp.float32)
        params += [w, b, gamma, beta]
    return tuple(params)


if __name__ == "__main__":
    key = jax.random.PRNGKey(0)
    kx, kg, kp = jax.random.split(key, 3)

    # Small shapes consistent with PredictorHeadConfig (out_dim=4) / MLP_layer.
    B, DIN, OUT_DIM = 64, 32, 4
    MLP_STATES = [64]                      # cfg.mlp_states
    LOSS_COEF = 0.5
    widths = [DIN] + MLP_STATES + [OUT_DIM]

    x = jax.random.normal(kx, (B, DIN), jnp.float32)
    gt = jax.random.normal(kg, (B, OUT_DIM), jnp.float32)
    params = make_params(kp, widths)

    # --- Test 1: default path (bf16 matmul on the MXU), MSE loss, grid of 2 blocks. ---
    loss, out = predictor_head_forward(x, gt, params,
                                       loss_coef=LOSS_COEF, loss_type='MSE')
    loss, out = jax.block_until_ready((loss, out))
    loss_ref, out_ref = predictor_head_reference(x, gt, params,
                                                 loss_coef=LOSS_COEF, loss_type='MSE')
    assert out.shape == (B, OUT_DIM), out.shape
    assert jnp.allclose(out, out_ref, rtol=3e-2, atol=3e-2), (
        float(jnp.max(jnp.abs(out - out_ref))))
    assert jnp.allclose(loss, loss_ref, rtol=3e-2, atol=3e-2), (
        float(loss), float(loss_ref))

    # --- Test 2: ragged batch (no wrapper-side padding), l1 loss, exact f32 matmul. ---
    B2 = 20
    x2, gt2 = x[:B2], gt[:B2]
    loss2, out2 = predictor_head_forward(x2, gt2, params,
                                         loss_coef=LOSS_COEF, loss_type='l1',
                                         matmul_dtype=jnp.float32)
    loss2, out2 = jax.block_until_ready((loss2, out2))
    loss2_ref, out2_ref = predictor_head_reference(x2, gt2, params,
                                                   loss_coef=LOSS_COEF, loss_type='l1')
    assert out2.shape == (B2, OUT_DIM), out2.shape
    assert jnp.allclose(out2, out2_ref, rtol=1e-2, atol=1e-2), (
        float(jnp.max(jnp.abs(out2 - out2_ref))))
    assert jnp.allclose(loss2, loss2_ref, rtol=1e-2, atol=1e-2), (
        float(loss2), float(loss2_ref))

    # --- Test 3: loss_coef == 0 short-circuit. ---
    z_loss, z_out = predictor_head_forward(x, gt, params, loss_coef=0.0)
    assert z_loss == 0 and z_out is None

    print("KERNEL_OK")
</pallas_src>

<mosaic_0001>
module attributes {stable_mosaic.version = 11 : i64} {
  func.func @_predictor_head_kernel(%arg0: i32, %arg1: memref<32x32xf32, #tpu.memory_space<vmem>>, %arg2: memref<32x4xf32, #tpu.memory_space<vmem>>, %arg3: memref<32x64xbf16, #tpu.memory_space<vmem>>, %arg4: memref<1x64xf32, #tpu.memory_space<vmem>>, %arg5: memref<1x64xf32, #tpu.memory_space<vmem>>, %arg6: memref<1x64xf32, #tpu.memory_space<vmem>>, %arg7: memref<64x4xbf16, #tpu.memory_space<vmem>>, %arg8: memref<1x4xf32, #tpu.memory_space<vmem>>, %arg9: memref<1x4xf32, #tpu.memory_space<vmem>>, %arg10: memref<1x4xf32, #tpu.memory_space<vmem>>, %arg11: memref<32x4xf32, #tpu.memory_space<vmem>>, %arg12: memref<32x1xf32, #tpu.memory_space<vmem>>) attributes {dimension_semantics = [#tpu.dimension_semantics<parallel>], iteration_bounds = array<i64: 2>, scalar_prefetch = 0 : i64, scratch_operands = 0 : i64, tpu.core_type = #tpu.core_type<tc>, window_params = [{transform_indices = @transform_0, window_bounds = array<i64: 32, 32>}, {transform_indices = @transform_1, window_bounds = array<i64: 32, 4>}, {pipeline_mode = #tpu.pipeline_mode<synchronous>, transform_indices = @transform_2, window_bounds = array<i64: 32, 64>}, {pipeline_mode = #tpu.pipeline_mode<synchronous>, transform_indices = @transform_3, window_bounds = array<i64: 1, 64>}, {pipeline_mode = #tpu.pipeline_mode<synchronous>, transform_indices = @transform_4, window_bounds = array<i64: 1, 64>}, {pipeline_mode = #tpu.pipeline_mode<synchronous>, transform_indices = @transform_5, window_bounds = array<i64: 1, 64>}, {pipeline_mode = #tpu.pipeline_mode<synchronous>, transform_indices = @transform_6, window_bounds = array<i64: 64, 4>}, {pipeline_mode = #tpu.pipeline_mode<synchronous>, transform_indices = @transform_7, window_bounds = array<i64: 1, 4>}, {pipeline_mode = #tpu.pipeline_mode<synchronous>, transform_indices = @transform_8, window_bounds = array<i64: 1, 4>}, {pipeline_mode = #tpu.pipeline_mode<synchronous>, transform_indices = @transform_9, window_bounds = array<i64: 1, 4>}, {transform_indices = @transform_10, window_bounds = array<i64: 32, 4>}, {transform_indices = @transform_11, window_bounds = array<i64: 32, 1>}]} {
    %c0 = arith.constant 0 : index
    %c0_0 = arith.constant 0 : index
    %0 = vector.load %arg1[%c0, %c0_0] : memref<32x32xf32, #tpu.memory_space<vmem>>, vector<32x32xf32>
    %1 = arith.truncf %0 : vector<32x32xf32> to vector<32x32xbf16>
    %c0_1 = arith.constant 0 : index
    %c0_2 = arith.constant 0 : index
    %2 = vector.load %arg3[%c0_1, %c0_2] : memref<32x64xbf16, #tpu.memory_space<vmem>>, vector<32x64xbf16>
    %cst = arith.constant dense<0.000000e+00> : vector<32x64xf32>
    %3 = tpu.matmul %1, %2, %cst {dimension_numbers = #tpu.dot_dimension_numbers<[1], [0], [0], [1], [0, 0, 1, 1], [], []>} : vector<32x32xbf16>, vector<32x64xbf16>, vector<32x64xf32> -> vector<32x64xf32>
    %c0_3 = arith.constant 0 : index
    %c0_4 = arith.constant 0 : index
    %4 = vector.load %arg4[%c0_3, %c0_4] : memref<1x64xf32, #tpu.memory_space<vmem>>, vector<1x64xf32>
    %5 = vector.broadcast %4 : vector<1x64xf32> to vector<32x64xf32>
    %6 = arith.addf %3, %5 : vector<32x64xf32>
    %cst_5 = arith.constant dense<0.000000e+00> : vector<32xf32>
    %7 = vector.multi_reduction <add>, %6, %cst_5 [1] : vector<32x64xf32> to vector<32xf32>
    %8 = vector.shape_cast %7 : vector<32xf32> to vector<32x1xf32>
    %cst_6 = arith.constant 6.400000e+01 : f32
    %9 = vector.broadcast %cst_6 : f32 to vector<32x1xf32>
    %10 = arith.divf %8, %9 : vector<32x1xf32>
    %11 = vector.broadcast %10 : vector<32x1xf32> to vector<32x64xf32>
    %12 = arith.subf %6, %11 : vector<32x64xf32>
    %13 = arith.mulf %12, %12 : vector<32x64xf32>
    %cst_7 = arith.constant dense<0.000000e+00> : vector<32xf32>
    %14 = vector.multi_reduction <add>, %13, %cst_7 [1] : vector<32x64xf32> to vector<32xf32>
    %15 = vector.shape_cast %14 : vector<32xf32> to vector<32x1xf32>
    %cst_8 = arith.constant 6.400000e+01 : f32
    %16 = vector.broadcast %cst_8 : f32 to vector<32x1xf32>
    %17 = arith.divf %15, %16 : vector<32x1xf32>
    %cst_9 = arith.constant 9.99999974E-6 : f32
    %18 = vector.broadcast %cst_9 : f32 to vector<32x1xf32>
    %19 = arith.addf %17, %18 : vector<32x1xf32>
    %20 = math.rsqrt %19 : vector<32x1xf32>
    %21 = vector.broadcast %20 : vector<32x1xf32> to vector<32x64xf32>
    %22 = arith.mulf %12, %21 : vector<32x64xf32>
    %c0_10 = arith.constant 0 : index
    %c0_11 = arith.constant 0 : index
    %23 = vector.load %arg5[%c0_10, %c0_11] : memref<1x64xf32, #tpu.memory_space<vmem>>, vector<1x64xf32>
    %24 = vector.broadcast %23 : vector<1x64xf32> to vector<32x64xf32>
    %25 = arith.mulf %22, %24 : vector<32x64xf32>
    %c0_12 = arith.constant 0 : index
    %c0_13 = arith.constant 0 : index
    %26 = vector.load %arg6[%c0_12, %c0_13] : memref<1x64xf32, #tpu.memory_space<vmem>>, vector<1x64xf32>
    %27 = vector.broadcast %26 : vector<1x64xf32> to vector<32x64xf32>
    %28 = arith.addf %25, %27 : vector<32x64xf32>
    %cst_14 = arith.constant 0.000000e+00 : f32
    %29 = vector.broadcast %cst_14 : f32 to vector<32x64xf32>
    %30 = arith.maximumf %28, %29 : vector<32x64xf32>
    %31 = arith.truncf %30 : vector<32x64xf32> to vector<32x64xbf16>
    %c0_15 = arith.constant 0 : index
    %c0_16 = arith.constant 0 : index
    %32 = vector.load %arg7[%c0_15, %c0_16] : memref<64x4xbf16, #tpu.memory_space<vmem>>, vector<64x4xbf16>
    %cst_17 = arith.constant dense<0.000000e+00> : vector<32x4xf32>
    %33 = tpu.matmul %31, %32, %cst_17 {dimension_numbers = #tpu.dot_dimension_numbers<[1], [0], [0], [1], [0, 0, 1, 1], [], []>} : vector<32x64xbf16>, vector<64x4xbf16>, vector<32x4xf32> -> vector<32x4xf32>
    %c0_18 = arith.constant 0 : index
    %c0_19 = arith.constant 0 : index
    %34 = vector.load %arg8[%c0_18, %c0_19] : memref<1x4xf32, #tpu.memory_space<vmem>>, vector<1x4xf32>
    %35 = vector.broadcast %34 : vector<1x4xf32> to vector<32x4xf32>
    %36 = arith.addf %33, %35 : vector<32x4xf32>
    %cst_20 = arith.constant dense<0.000000e+00> : vector<32xf32>
    %37 = vector.multi_reduction <add>, %36, %cst_20 [1] : vector<32x4xf32> to vector<32xf32>
    %38 = vector.shape_cast %37 : vector<32xf32> to vector<32x1xf32>
    %cst_21 = arith.constant 4.000000e+00 : f32
    %39 = vector.broadcast %cst_21 : f32 to vector<32x1xf32>
    %40 = arith.divf %38, %39 : vector<32x1xf32>
    %41 = vector.broadcast %40 : vector<32x1xf32> to vector<32x4xf32>
    %42 = arith.subf %36, %41 : vector<32x4xf32>
    %43 = arith.mulf %42, %42 : vector<32x4xf32>
    %cst_22 = arith.constant dense<0.000000e+00> : vector<32xf32>
    %44 = vector.multi_reduction <add>, %43, %cst_22 [1] : vector<32x4xf32> to vector<32xf32>
    %45 = vector.shape_cast %44 : vector<32xf32> to vector<32x1xf32>
    %cst_23 = arith.constant 4.000000e+00 : f32
    %46 = vector.broadcast %cst_23 : f32 to vector<32x1xf32>
    %47 = arith.divf %45, %46 : vector<32x1xf32>
    %cst_24 = arith.constant 9.99999974E-6 : f32
    %48 = vector.broadcast %cst_24 : f32 to vector<32x1xf32>
    %49 = arith.addf %47, %48 : vector<32x1xf32>
    %50 = math.rsqrt %49 : vector<32x1xf32>
    %51 = vector.broadcast %50 : vector<32x1xf32> to vector<32x4xf32>
    %52 = arith.mulf %42, %51 : vector<32x4xf32>
    %c0_25 = arith.constant 0 : index
    %c0_26 = arith.constant 0 : index
    %53 = vector.load %arg9[%c0_25, %c0_26] : memref<1x4xf32, #tpu.memory_space<vmem>>, vector<1x4xf32>
    %54 = vector.broadcast %53 : vector<1x4xf32> to vector<32x4xf32>
    %55 = arith.mulf %52, %54 : vector<32x4xf32>
    %c0_27 = arith.constant 0 : index
    %c0_28 = arith.constant 0 : index
    %56 = vector.load %arg10[%c0_27, %c0_28] : memref<1x4xf32, #tpu.memory_space<vmem>>, vector<1x4xf32>
    %57 = vector.broadcast %56 : vector<1x4xf32> to vector<32x4xf32>
    %58 = arith.addf %55, %57 : vector<32x4xf32>
    %c0_29 = arith.constant 0 : index
    %c0_30 = arith.constant 0 : index
    %59 = vector.load %arg11[%c0_29, %c0_30] : memref<32x4xf32, #tpu.memory_space<vmem>>, vector<32x4xf32>
    tpu.vector_store %arg11[%c0_29, %c0_30], %58 {strides = array<i32>} : memref<32x4xf32, #tpu.memory_space<vmem>>, vector<32x4xf32>,
    %c0_31 = arith.constant 0 : index
    %c0_32 = arith.constant 0 : index
    %60 = vector.load %arg2[%c0_31, %c0_32] : memref<32x4xf32, #tpu.memory_space<vmem>>, vector<32x4xf32>
    %61 = arith.subf %58, %60 : vector<32x4xf32>
    %62 = arith.mulf %61, %61 : vector<32x4xf32>
    %c32_i32 = arith.constant 32 : i32
    %63 = arith.muli %arg0, %c32_i32 : i32
    %64 = tpu.iota {dimensions = array<i32: 0>} : vector<32x1xi32>
    %65 = vector.broadcast %63 : i32 to vector<32x1xi32>
    %66 = arith.addi %65, %64 : vector<32x1xi32>
    %cst_33 = arith.constant dense<0.000000e+00> : vector<32xf32>
    %67 = vector.multi_reduction <add>, %62, %cst_33 [1] : vector<32x4xf32> to vector<32xf32>
    %68 = vector.shape_cast %67 : vector<32xf32> to vector<32x1xf32>
    %c64_i32 = arith.constant 64 : i32
    %69 = vector.broadcast %c64_i32 : i32 to vector<32x1xi32>
    %70 = arith.cmpi slt, %66, %69 : vector<32x1xi32>
    %cst_34 = arith.constant 0.000000e+00 : f32
    %71 = vector.broadcast %cst_34 : f32 to vector<32x1xf32>
    %72 = arith.select %70, %68, %71 : vector<32x1xi1>, vector<32x1xf32>
    %c0_35 = arith.constant 0 : index
    %c0_36 = arith.constant 0 : index
    %73 = vector.load %arg12[%c0_35, %c0_36] : memref<32x1xf32, #tpu.memory_space<vmem>>, vector<32x1xf32>
    tpu.vector_store %arg12[%c0_35, %c0_36], %72 {strides = array<i32>} : memref<32x1xf32, #tpu.memory_space<vmem>>, vector<32x1xf32>,
    return
  }
  func.func @transform_0(%arg0: i32) -> (i32, i32) {
    %c0_i32 = arith.constant 0 : i32
    %c0_i32_0 = arith.constant 0 : i32
    return %arg0, %c0_i32 : i32, i32
  }
  func.func @transform_1(%arg0: i32) -> (i32, i32) {
    %c0_i32 = arith.constant 0 : i32
    %c0_i32_0 = arith.constant 0 : i32
    return %arg0, %c0_i32 : i32, i32
  }
  func.func @transform_2(%arg0: i32) -> (i32, i32) {
    %c0_i32 = arith.constant 0 : i32
    %c0_i32_0 = arith.constant 0 : i32
    %c0_i32_1 = arith.constant 0 : i32
    return %c0_i32, %c0_i32_0 : i32, i32
  }
  func.func @transform_3(%arg0: i32) -> (i32, i32) {
    %c0_i32 = arith.constant 0 : i32
    %c0_i32_0 = arith.constant 0 : i32
    %c0_i32_1 = arith.constant 0 : i32
    return %c0_i32, %c0_i32_0 : i32, i32
  }
  func.func @transform_4(%arg0: i32) -> (i32, i32) {
    %c0_i32 = arith.constant 0 : i32
    %c0_i32_0 = arith.constant 0 : i32
    %c0_i32_1 = arith.constant 0 : i32
    return %c0_i32, %c0_i32_0 : i32, i32
  }
  func.func @transform_5(%arg0: i32) -> (i32, i32) {
    %c0_i32 = arith.constant 0 : i32
    %c0_i32_0 = arith.constant 0 : i32
    %c0_i32_1 = arith.constant 0 : i32
    return %c0_i32, %c0_i32_0 : i32, i32
  }
  func.func @transform_6(%arg0: i32) -> (i32, i32) {
    %c0_i32 = arith.constant 0 : i32
    %c0_i32_0 = arith.constant 0 : i32
    %c0_i32_1 = arith.constant 0 : i32
    return %c0_i32, %c0_i32_0 : i32, i32
  }
  func.func @transform_7(%arg0: i32) -> (i32, i32) {
    %c0_i32 = arith.constant 0 : i32
    %c0_i32_0 = arith.constant 0 : i32
    %c0_i32_1 = arith.constant 0 : i32
    return %c0_i32, %c0_i32_0 : i32, i32
  }
  func.func @transform_8(%arg0: i32) -> (i32, i32) {
    %c0_i32 = arith.constant 0 : i32
    %c0_i32_0 = arith.constant 0 : i32
    %c0_i32_1 = arith.constant 0 : i32
    return %c0_i32, %c0_i32_0 : i32, i32
  }
  func.func @transform_9(%arg0: i32) -> (i32, i32) {
    %c0_i32 = arith.constant 0 : i32
    %c0_i32_0 = arith.constant 0 : i32
    %c0_i32_1 = arith.constant 0 : i32
    return %c0_i32, %c0_i32_0 : i32, i32
  }
  func.func @transform_10(%arg0: i32) -> (i32, i32) {
    %c0_i32 = arith.constant 0 : i32
    %c0_i32_0 = arith.constant 0 : i32
    return %arg0, %c0_i32 : i32, i32
  }
  func.func @transform_11(%arg0: i32) -> (i32, i32) {
    %c0_i32 = arith.constant 0 : i32
    %c0_i32_0 = arith.constant 0 : i32
    return %arg0, %c0_i32 : i32, i32
  }
}

</mosaic_0001>

<bundles_post_ra>
// kernel: tpu_custom_call.1
= control target key start
LH: loop header
LB: loop body
LE: loop exit
PB: predicated region body
PF: predicated region fallthrough
CT: control target
= control target key end

     0   :  { %s1078_s17 = smov 0   ;;  %s1177_s0 = inlined_call_operand.vmem [shape: f32[64,32], index: 0, kind: input, shape index: {}]   ;;  %s1178_s1 = inlined_call_operand.vmem [shape: f32[64,4], index: 1, kind: input, shape index: {}]   ;;  %s1179_s2 = inlined_call_operand.vmem [shape: bf16[32,64], index: 2, kind: input, shape index: {}]   ;;  %s1180_s3 = inlined_call_operand.vmem [shape: f32[1,64], index: 3, kind: input, shape index: {}]   ;;  %s1181_s4 = inlined_call_operand.vmem [shape: f32[1,64], index: 4, kind: input, shape index: {}]   ;;  %s1182_s5 = inlined_call_operand.vmem [shape: f32[1,64], index: 5, kind: input, shape index: {}]   ;;  %s1183_s6 = inlined_call_operand.vmem [shape: bf16[64,4], index: 6, kind: input, shape index: {}]   ;;  %s1184_s7 = inlined_call_operand.vmem [shape: f32[1,4], index: 7, kind: input, shape index: {}]   ;;  %s1185_s8 = inlined_call_operand.vmem [shape: f32[1,4], index: 8, kind: input, shape index: {}]   ;;  %s1186_s9 = inlined_call_operand.vmem [shape: f32[1,4], index: 9, kind: input, shape index: {}]   ;;  %s1187_s10 = inlined_call_operand.vmem [shape: f32[64,4], index: 10, kind: output, shape index: {0}]   ;;  %s1188_s11 = inlined_call_operand.vmem [shape: f32[64,1], index: 11, kind: output, shape index: {1}]  }
   0x1 LB: > { %s918_s18 = sadd.s32 4294967295, %s1016_s17   ;;  %p922_p0 = scmp.ge.s32.totalorder %s1016_s17, 1  ;;  %s1016_s17 = sphi %s1078_s17, %s22_s17  }
   0x2   : > { %p352_p1 = scmp.lt.s32.totalorder %s1016_s17, 3 }
   0x4   : > { %p353_p2 = pnand %p922_p0, %p352_p1 }
   0x5   : > { %v988_v0 = vld [vmem:[%s1179_s2] sm:$0xff] (!%p353_p2)   ;;  %s923_s21 = sshll.u32 (!%p353_p2), %s918_s18, 2  ;;  %v989_v1 = vld [vmem:[%s1179_s2 + $0x8] sm:$0xff] (!%p353_p2)   ;;  %vm456_vm0 = vcmask (!%p353_p2), 261120   ;;  %vm512_vm1 = vcmask (!%p353_p2), 523264   ;;  %v992_v43 = vld [vmem:[%s1183_s6 + $0x10] sm:$0xff] (!%p353_p2)  }
   0x6   : > { %356 = sbr.rel (%p353_p2) target bundleno = 1243 (0x4db), region = 60  ;;  %p403_p3 = scmp.lt.s32.totalorder (!%p353_p2), %s923_s21, 7  ;;  %960 = vmatprep.subr.bf16.mxu0 (!%p353_p2), %v988_v0  ;;  %v931_v8 = vld [vmem:[%s1180_s3] ss:$0 sm:$0xff] (!%p353_p2)  ;;  %v991_v42 = vld [vmem:[%s1183_s6 + $0x8] sm:$0xff] (!%p353_p2)   ;;  %v993_v44 = vld [vmem:[%s1183_s6 + $0x18] sm:$0xff] (!%p353_p2)  }
   0x7   : > { %961 = vmatpush3.bf16.msra.mxu0 (!%p353_p2), %v988_v0  ;;  %v990_v41 = vld [vmem:[%s1183_s6] sm:$0xff] (!%p353_p2)   ;;  %vm688_vm2 = vcmask (!%p353_p2), 31744   ;;  %vm811_vm4 = vcmask (!%p353_p2), 7168  }
   0x8   : > { %962 = vmatprep.subr.bf16.mxu0 (!%p353_p2), %v989_v1  ;;  %968 = vmatprep.subr.bf16.mxu1 (!%p353_p2), %v990_v41  ;;  %v936_v58 = vld [vmem:[%s1181_s4] ss:$0 sm:$0xff] (!%p353_p2) }
   0x9   : > { %969 = vmatpush3.bf16.msra.mxu1 (!%p353_p2), %v990_v41  ;;  %v937_v62 = vld [vmem:[%s1182_s5] ss:$0 sm:$0xff] (!%p353_p2) }
   0xa   : > { %970 = vmatprep.subr.bf16.mxu1 (!%p353_p2), %v991_v42 }
   0xb   : > { %963 = vmatpush3.bf16.msra.mxu0 (!%p353_p2), %v989_v1 }
   0xd   : > { %s1190_s21 = smov (!%p403_p3, %s923_s21), 7  ;;  %971 = vmatpush3.bf16.msra.mxu1 %v991_v42 }
   0xe   : > { %s1094_s24 = sshll.u32 %s1190_s21, 3  ;;  %972 = vmatprep.subr.bf16.mxu1 %v992_v43  ;;  %s947_s21 = sshll.u32 %s918_s18, 5 }
   0xf   : > { %s406_s27 = scalar_lea.vmem %s1177_s0, %s1094_s24  ;;  %s412_s13 = scalar_lea.vmem %s1178_s1, %s1094_s24 }
  0x10   : > { %v427_v2 = vld [vmem:[%s406_s27] sm:$0xff]  ;;  %v428_v3 = vld [vmem:[%s406_s27 + $0x8] sm:$0xff]  ;;  %v429_v4 = vld [vmem:[%s406_s27 + $0x10] sm:$0xff]  ;;  %s418_s20 = scalar_lea.vmem %s1187_s10, %s1094_s24  ;;  %s424_s25 = scalar_lea.vmem %s1188_s11, %s1094_s24 }
  0x11   : > { %v431_v5 = vpack.c.bf16 %v428_v3, %v427_v2  ;;  %v430_v6 = vld [vmem:[%s406_s27 + $0x18] sm:$0xff]  ;;  %973 = vmatpush3.bf16.msra.mxu1 %v992_v43 }
  0x12   : > { %v432_v7 = vpack.c.bf16 %v430_v6, %v429_v4  ;;  %974 = vmatprep.subr.bf16.mxu1 %v993_v44 }
  0x13   : > { %964 = vmatprep.mubr.msk.bf16.mxu0 %vm456_vm0, %v431_v5 }
  0x14   : > { %965 = vmatmul.mubr.msk.bf16.vlgmr.msra.gmra.mrb[0].mxu0 %vm456_vm0, %v432_v7 }
  0x15   : > { %975 = vmatpush3.bf16.msra.mxu1 %v993_v44 }
  0xe7   : > { %v966_v9 = vpop.f32.mrb[0].mxu0 }
  0xe8   : > { %v506_v10 = vadd.f32 %v966_v9, %v931_v8  ;;  %v497_v11 = vpop.f32.mrb[1].mxu0 }
  0xe9   : > { %v498_v12 = vadd.f32 %v931_v8, %v497_v11  ;;  %v967_v13 = vpop.f32.mrb[2].mxu0 }
  0xea   : > { %v509_v14 = vadd.f32 %v967_v13, %v931_v8  ;;  %v500_v15 = vpop.f32.mrb[3].mxu0  ;;  %v519_v16 = vsel %vm512_vm1, %v506_v10, 0.0 }
  0xeb   : > { %v501_v17 = vadd.f32 %v931_v8, %v500_v15  ;;  %520 = vadd.xlane.f32.xlu1 %v519_v16  ;;  %v513_v18 = vsel %vm512_vm1, %v498_v12, 0.0 }
  0xec   : > { %514 = vadd.xlane.f32.xlu0 %v513_v18  ;;  %v522_v19 = vsel %vm512_vm1, %v509_v14, 0.0 }
  0xed   : > { %v516_v20 = vsel %vm512_vm1, %v501_v17, 0.0 }
  0xef   : > { %523 = vadd.xlane.f32.xlu1 %v522_v19 }
  0xf0   : > { %517 = vadd.xlane.f32.xlu0 %v516_v20 }
 0x178   : > { %v521_v21 = vpop.xlane.xlu1 %520 }
 0x179   : > { %v528_v22 = vmul.f32 0.015625, %v521_v21  ;;  %v515_v23 = vpop.xlane.xlu0 %514 }
 0x17a   : > { %v526_v24 = vmul.f32 0.015625, %v515_v23 }
 0x17b   : > { %v532_v25 = vsub.f32 %v506_v10, %v528_v22 }
 0x17c   : > { %v530_v26 = vsub.f32 %v498_v12, %v526_v24  ;;  %v524_v27 = vpop.xlane.xlu1 %523 }
 0x17d   : > { %v529_v28 = vmul.f32 0.015625, %v524_v27  ;;  %v518_v29 = vpop.xlane.xlu0 %517  ;;  %v536_v35 = vmul.f32 %v532_v25, %v532_v25 }
 0x17e   : > { %v527_v30 = vmul.f32 0.015625, %v518_v29  ;;  %v534_v31 = vmul.f32 %v530_v26, %v530_v26 }
 0x17f   : > { %v533_v32 = vsub.f32 %v509_v14, %v529_v28  ;;  %v544_v37 = vsel %vm512_vm1, %v536_v35, 0.0 }
 0x180   : > { %v531_v33 = vsub.f32 %v501_v17, %v527_v30  ;;  %v538_v34 = vsel %vm512_vm1, %v534_v31, 0.0  ;;  %v938_v17 = vld [vmem:[%s1184_s7] ss:$0 sm:$0xff] }
 0x181   : > { %539 = vadd.xlane.f32.xlu0 %v538_v34  ;;  %v537_v39 = vmul.f32 %v533_v32, %v533_v32 }
 0x182   : > { %v535_v36 = vmul.f32 %v531_v33, %v531_v33 }
 0x183   : > { %v547_v40 = vsel %vm512_vm1, %v537_v39, 0.0 }
 0x184   : > { %v541_v38 = vsel %vm512_vm1, %v535_v36, 0.0 }
 0x185   : > { %545 = vadd.xlane.f32.xlu0 %v544_v37  ;;  %542 = vadd.xlane.f32.xlu1 %v541_v38 }
 0x189   : > { %548 = vadd.xlane.f32.xlu1 %v547_v40 }
 0x20e   : > { %v540_v45 = vpop.xlane.xlu0 %539 }
 0x20f   : > { %v550_v46 = vmul.f32 0.015625, %v540_v45 }
 0x211   : > { %v554_v47 = vadd.f32 1e-05, %v550_v46 }
 0x212   : > { %v543_v48 = vpop.xlane.xlu1 %542  ;;  %v546_v49 = vpop.xlane.xlu0 %545 }
 0x213   : > { %994 = vrsqrt.f32 %v554_v47  ;;  %v551_v50 = vmul.f32 0.015625, %v543_v48  ;;  %v552_v51 = vmul.f32 0.015625, %v546_v49 }
 0x215   : > { %v555_v52 = vadd.f32 1e-05, %v551_v50  ;;  %v556_v53 = vadd.f32 1e-05, %v552_v51 }
 0x216   : > { %v549_v54 = vpop.xlane.xlu1 %548 }
 0x217   : > { %996 = vrsqrt.f32 %v555_v52  ;;  %v553_v55 = vmul.f32 0.015625, %v549_v54 }
 0x218   : > { %998 = vrsqrt.f32 %v556_v53 }
 0x219   : > { %v557_v56 = vadd.f32 1e-05, %v553_v55 }
 0x21b   : > { %1000 = vrsqrt.f32 %v557_v56 }
 0x21d   : > { %v995_v57 = vpop.eup %994 }
 0x21e   : > { %v562_v59 = vmul.f32 %v995_v57, %v530_v26 }
 0x220   : > { %v573_v60 = vmul.f32 %v936_v58, %v562_v59 }
 0x221   : > { %v997_v61 = vpop.eup %996 }
 0x222   : > { %v999_v63 = vpop.eup %998  ;;  %v563_v0 = vmul.f32 %v997_v61, %v531_v33  ;;  %v584_v3 = vadd.f32 %v937_v62, %v573_v60 }
 0x223   : > { %v564_v1 = vmul.f32 %v999_v63, %v532_v25  ;;  %v945_v63 = vld [vmem:[%s1185_s8] ss:$0 sm:$0xff] }
 0x224   : > { %v574_v2 = vmul.f32 %v936_v58, %v563_v0  ;;  %v588_v8 = vmax.f32 %v584_v3, 0.0 }
 0x225   : > { %v1001_v4 = vpop.eup %1000  ;;  %v575_v5 = vmul.f32 %v936_v58, %v564_v1 }
 0x226   : > { %v565_v6 = vmul.f32 %v1001_v4, %v533_v32  ;;  %v585_v7 = vadd.f32 %v937_v62, %v574_v2  ;;  %v946_v2 = vld [vmem:[%s1186_s9] ss:$0 sm:$0xff] }
 0x227   : > { %v586_v11 = vadd.f32 %v937_v62, %v575_v5 }
 0x228   : > { %v589_v9 = vmax.f32 %v585_v7, 0.0  ;;  %v576_v10 = vmul.f32 %v936_v58, %v565_v6  ;;  %v768_v6 = vld [vmem:[%s412_s13] sm:$0xff] }
 0x229   : > { %v590_v14 = vmax.f32 %v586_v11, 0.0  ;;  %v769_v11 = vld [vmem:[%s412_s13 + $0x8] sm:$0xff] }
 0x22a   : > { %v592_v12 = vpack.c.bf16 %v589_v9, %v588_v8  ;;  %v587_v13 = vadd.f32 %v937_v62, %v576_v10 }
 0x22c   : > { %976 = vmatprep.mubr.msk.bf16.mxu1 %vm512_vm1, %v592_v12  ;;  %v591_v15 = vmax.f32 %v587_v13, 0.0 }
 0x22e   : > { %v593_v16 = vpack.c.bf16 %v591_v15, %v590_v14 }
 0x230   : > { %977 = vmatmul.mubr.msk.bf16.vlgmr.msra.gmra.mrb[0].mxu1 %vm512_vm1, %v593_v16  ;;  %v770_v16 = vld [vmem:[%s412_s13 + $0x10] sm:$0xff] }
 0x303   : > { %v978_v18 = vpop.f32.mrb[0].mxu1 }
 0x304   : > { %v673_v19 = vpop.f32.mrb[1].mxu1  ;;  %v682_v23 = vadd.f32 %v978_v18, %v938_v17 }
 0x305   : > { %v674_v20 = vadd.f32 %v938_v17, %v673_v19  ;;  %v979_v21 = vpop.f32.mrb[2].mxu1 }
 0x306   : > { %v676_v22 = vpop.f32.mrb[3].mxu1  ;;  %v685_v26 = vadd.f32 %v979_v21, %v938_v17  ;;  %v695_v28 = vsel %vm688_vm2, %v682_v23, 0.0  ;;  %v771_v21 = vld [vmem:[%s412_s13 + $0x18] sm:$0xff] }
 0x307   : > { %v677_v24 = vadd.f32 %v938_v17, %v676_v22  ;;  %v689_v25 = vsel %vm688_vm2, %v674_v20, 0.0 }
 0x308   : > { %690 = vadd.xlane.f32.xlu0 %v689_v25  ;;  %v698_v29 = vsel %vm688_vm2, %v685_v26, 0.0 }
 0x309   : > { %v692_v27 = vsel %vm688_vm2, %v677_v24, 0.0 }
 0x30a   : > { %693 = vadd.xlane.f32.xlu1 %v692_v27 }
 0x30c   : > { %696 = vadd.xlane.f32.xlu0 %v695_v28 }
 0x30e   : > { %699 = vadd.xlane.f32.xlu1 %v698_v29 }
 0x395   : > { %v691_v30 = vpop.xlane.xlu0 %690 }
 0x396   : > { %v702_v31 = vmul.f32 0.25, %v691_v30 }
 0x397   : > { %v694_v32 = vpop.xlane.xlu1 %693 }
 0x398   : > { %v706_v33 = vsub.f32 %v674_v20, %v702_v31  ;;  %v703_v34 = vmul.f32 0.25, %v694_v32  ;;  %v781_v32 = vlaneseq }
 0x399   : > { %v697_v35 = vpop.xlane.xlu0 %696 }
 0x39a   : > { %v707_v36 = vsub.f32 %v677_v24, %v703_v34  ;;  %v704_v37 = vmul.f32 0.25, %v697_v35  ;;  %v710_v38 = vmul.f32 %v706_v33, %v706_v33  ;;  %v786_v34 = vstv %s947_s21 }
 0x39b   : > { %v700_v39 = vpop.xlane.xlu1 %699 }
 0x39c   : > { %v708_v40 = vsub.f32 %v682_v23, %v704_v37  ;;  %v705_v41 = vmul.f32 0.25, %v700_v39  ;;  %v714_v42 = vsel %vm688_vm2, %v710_v38, 0.0  ;;  %v711_v43 = vmul.f32 %v707_v36, %v707_v36 }
 0x39d   : > { %715 = vadd.xlane.f32.xlu0 %v714_v42 }
 0x39e   : > { %v709_v44 = vsub.f32 %v685_v26, %v705_v41  ;;  %v717_v45 = vsel %vm688_vm2, %v711_v43, 0.0  ;;  %v712_v46 = vmul.f32 %v708_v40, %v708_v40 }
 0x39f   : > { %718 = vadd.xlane.f32.xlu1 %v717_v45 }
 0x3a0   : > { %v720_v47 = vsel %vm688_vm2, %v712_v46, 0.0  ;;  %v713_v48 = vmul.f32 %v709_v44, %v709_v44 }
 0x3a1   : > { %721 = vadd.xlane.f32.xlu0 %v720_v47 }
 0x3a2   : > { %v723_v49 = vsel %vm688_vm2, %v713_v48, 0.0 }
 0x3a3   : > { %724 = vadd.xlane.f32.xlu1 %v723_v49 }
 0x42a   : > { %v716_v50 = vpop.xlane.xlu0 %715 }
 0x42b   : > { %v726_v51 = vmul.f32 0.25, %v716_v50 }
 0x42c   : > { %v719_v52 = vpop.xlane.xlu1 %718 }
 0x42d   : > { %v730_v53 = vadd.f32 1e-05, %v726_v51  ;;  %v727_v54 = vmul.f32 0.25, %v719_v52 }
 0x42e   : > { %v722_v55 = vpop.xlane.xlu0 %721 }
 0x42f   : > { %1002 = vrsqrt.f32 %v730_v53  ;;  %v731_v56 = vadd.f32 1e-05, %v727_v54  ;;  %v728_v57 = vmul.f32 0.25, %v722_v55 }
 0x430   : > { %v725_v58 = vpop.xlane.xlu1 %724 }
 0x431   : > { %1004 = vrsqrt.f32 %v731_v56  ;;  %v732_v59 = vadd.f32 1e-05, %v728_v57  ;;  %v729_v60 = vmul.f32 0.25, %v725_v58 }
 0x433   : > { %1006 = vrsqrt.f32 %v732_v59  ;;  %v733_v61 = vadd.f32 1e-05, %v729_v60 }
 0x435   : > { %1008 = vrsqrt.f32 %v733_v61 }
 0x439   : > { %v1003_v62 = vpop.eup %1002 }
 0x43a   : > { %v738_v0 = vmul.f32 %v1003_v62, %v706_v33  ;;  %v782_v33 = vshrl.u32 %v781_v32, 7 }
 0x43b   : > { %v1005_v1 = vpop.eup %1004 }
 0x43c   : > { %v749_v3 = vmul.f32 %v945_v63, %v738_v0  ;;  %v739_v4 = vmul.f32 %v1005_v1, %v707_v36  ;;  %v783_v35 = vadd.s32 8, %v782_v33  ;;  %v787_v36 = vadd.s32 %v786_v34, %v782_v33 }
 0x43d   : > { %v1007_v5 = vpop.eup %1006  ;;  %v784_v37 = vadd.s32 16, %v782_v33  ;;  %v785_v39 = vadd.s32 24, %v782_v33 }
 0x43e   : > { %v760_v7 = vadd.f32 %v946_v2, %v749_v3  ;;  %v750_v8 = vmul.f32 %v945_v63, %v739_v4  ;;  %v740_v9 = vmul.f32 %v1007_v5, %v708_v40  ;;  %v788_v38 = vadd.s32 %v786_v34, %v783_v35 }
 0x43f   : > { %v1009_v10 = vpop.eup %1008  ;;  %vm803_vm3 = vcmp.lt.s32.totalorder %v787_v36, 64  ;;  %v789_v40 = vadd.s32 %v786_v34, %v784_v37  ;;  %v790_v42 = vadd.s32 %v786_v34, %v785_v39 }
 0x440   : > { %v772_v12 = vsub.f32 %v760_v7, %v768_v6  ;;  %764 = vst.msk [vmem:[%s418_s20] sm:$0xff] %vm688_vm2, %v760_v7  ;;  %v761_v13 = vadd.f32 %v946_v2, %v750_v8  ;;  %v751_v14 = vmul.f32 %v945_v63, %v740_v9  ;;  %v741_v15 = vmul.f32 %v1009_v10, %v709_v44 }
 0x441   : > { %vm804_vm5 = vcmp.lt.s32.totalorder %v788_v38, 64  ;;  %vm805_vm6 = vcmp.lt.s32.totalorder %v789_v40, 64  ;;  %vm806_vm7 = vcmp.lt.s32.totalorder %v790_v42, 64 }
 0x442   : > { %v776_v17 = vmul.f32 %v772_v12, %v772_v12  ;;  %v773_v18 = vsub.f32 %v761_v13, %v769_v11  ;;  %765 = vst.msk [vmem:[%s418_s20 + $0x8] sm:$0xff] %vm688_vm2, %v761_v13  ;;  %v762_v19 = vadd.f32 %v946_v2, %v751_v14  ;;  %v752_v20 = vmul.f32 %v945_v63, %v741_v15 }
 0x444   : > { %v791_v22 = vsel %vm688_vm2, %v776_v17, 0.0  ;;  %v777_v23 = vmul.f32 %v773_v18, %v773_v18  ;;  %v774_v24 = vsub.f32 %v762_v19, %v770_v16  ;;  %766 = vst.msk [vmem:[%s418_s20 + $0x10] sm:$0xff] %vm688_vm2, %v762_v19  ;;  %v763_v25 = vadd.f32 %v946_v2, %v752_v20 }
 0x445   : > { %792 = vadd.xlane.f32.xlu0 %v791_v22 }
 0x446   : > { %v794_v26 = vsel %vm688_vm2, %v777_v23, 0.0  ;;  %v778_v27 = vmul.f32 %v774_v24, %v774_v24  ;;  %v775_v28 = vsub.f32 %v763_v25, %v771_v21  ;;  %767 = vst.msk [vmem:[%s418_s20 + $0x18] sm:$0xff] %vm688_vm2, %v763_v25 }
 0x447   : > { %795 = vadd.xlane.f32.xlu1 %v794_v26 }
 0x448   : > { %v797_v29 = vsel %vm688_vm2, %v778_v27, 0.0  ;;  %v779_v30 = vmul.f32 %v775_v28, %v775_v28 }
 0x449   : > { %798 = vadd.xlane.f32.xlu0 %v797_v29 }
 0x44a   : > { %v800_v31 = vsel %vm688_vm2, %v779_v30, 0.0 }
 0x44b   : > { %801 = vadd.xlane.f32.xlu1 %v800_v31 }
 0x4d2   : > { %v793_v41 = vpop.xlane.xlu0 %792 }
 0x4d3   : > { %v807_v43 = vsel %vm803_vm3, %v793_v41, 0.0 }
 0x4d4   : > { %812 = vst.msk [vmem:[%s424_s25] sm:$0xff] %vm811_vm4, %v807_v43  ;;  %v796_v44 = vpop.xlane.xlu1 %795 }
 0x4d5   : > { %v808_v45 = vsel %vm804_vm5, %v796_v44, 0.0 }
 0x4d6   : > { %813 = vst.msk [vmem:[%s424_s25 + $0x8] sm:$0xff] %vm811_vm4, %v808_v45  ;;  %v799_v46 = vpop.xlane.xlu0 %798 }
 0x4d7   : > { %v809_v47 = vsel %vm805_vm6, %v799_v46, 0.0 }
 0x4d8   : > { %814 = vst.msk [vmem:[%s424_s25 + $0x10] sm:$0xff] %vm811_vm4, %v809_v47  ;;  %v802_v48 = vpop.xlane.xlu1 %801 }
 0x4d9   : > { %v810_v49 = vsel %vm806_vm7, %v802_v48, 0.0 }
 0x4da   : > { %815 = vst.msk [vmem:[%s424_s25 + $0x18] sm:$0xff] %vm811_vm4, %v810_v49 }
 0x4db PF: > { %s22_s17 = sadd.s32 1, %s1016_s17  }
 0x4dc   : > { %p19_p4 = scmp.ge.s32.totalorder %s22_s17, 4  }
 0x4de   :  { %21 = sbr.rel (!%p19_p4) target bundleno = 1 (0x1), region = 105 }

</bundles_post_ra>
